<compile_context>
chip_gen: v5e
topology: v5e:2x2
jax: 0.10.0
libtpu: 0.0.40
codegen_flags: <defaults>
</compile_context>

<pallas_src>
import jax
import jax.numpy as jnp
from jax.experimental import pallas as pl
from jax.experimental.pallas import tpu as pltpu


# ----------------------------------------------------------------------------
# Helpers
# ----------------------------------------------------------------------------
def _round_up(x: int, m: int) -> int:
    return (x + m - 1) // m * m


def _interp_matrix(out_size: int, in_size: int, out_pad: int, dtype) -> jnp.ndarray:
    """(out_pad, in_size) half-pixel bilinear weight matrix.

    Rows >= out_size are zero (padding rows); valid rows sum to 1.
    """
    i = jnp.arange(out_pad, dtype=jnp.float32)
    src = (i + 0.5) * (in_size / out_size) - 0.5
    src = jnp.clip(src, 0.0, float(in_size - 1))
    x0 = jnp.floor(src).astype(jnp.int32)
    x1 = jnp.minimum(x0 + 1, in_size - 1)
    frac = src - x0.astype(jnp.float32)
    w = (jax.nn.one_hot(x0, in_size, dtype=jnp.float32) * (1.0 - frac)[:, None]
         + jax.nn.one_hot(x1, in_size, dtype=jnp.float32) * frac[:, None])
    valid = (i < out_size).astype(jnp.float32)[:, None]
    return (w * valid).astype(dtype)


# ----------------------------------------------------------------------------
# Pallas kernel: one (channel, row-tile) block of the separable resize.
# ----------------------------------------------------------------------------
def _resize_kernel(wh_ref, img_ref, wwT_ref, out_ref):
    # wh_ref:  (tile_h, H)          bf16   (row-tile of height-interp weights)
    # img_ref: (1, H, W)            bf16   (one channel, full frame)
    # wwT_ref: (W, new_w_pad)       bf16   (width-interp weights, transposed)
    # out_ref: (1, tile_h, new_w_pad) f32
    tmp = jnp.dot(wh_ref[...], img_ref[0],
                  preferred_element_type=jnp.float32)          # (tile_h, W) f32
    out_ref[0] = jnp.dot(tmp.astype(jnp.bfloat16), wwT_ref[...],
                         preferred_element_type=jnp.float32)   # (tile_h, new_w_pad)


# ----------------------------------------------------------------------------
# Wrappers
# ----------------------------------------------------------------------------
def resize_image_pallas(image: jnp.ndarray, new_h: int, new_w: int,
                        tile_h: int = 256) -> jnp.ndarray:
    """image: (C, H, W) float32 -> (C, new_h, new_w) float32."""
    C, H, W = image.shape

    # Row tiling (sublane-friendly) and lane-dense padded output width.
    new_h_pad = _round_up(new_h, 8)
    tile_h = min(tile_h, new_h_pad)          # either full (multiple of 8) or 256
    new_h_pad = _round_up(new_h_pad, tile_h)
    new_w_pad = _round_up(new_w, 128)
    num_row_tiles = new_h_pad // tile_h

    # bf16 inputs (halves DMA bytes, full-rate MXU); accumulation stays f32.
    wh = _interp_matrix(new_h, H, new_h_pad, jnp.bfloat16)        # (new_h_pad, H)
    wwT = _interp_matrix(new_w, W, new_w_pad, jnp.bfloat16).T     # (W, new_w_pad)
    img_bf16 = image.astype(jnp.bfloat16)

    out_padded = pl.pallas_call(
        _resize_kernel,
        out_shape=jax.ShapeDtypeStruct((C, new_h_pad, new_w_pad), jnp.float32),
        grid=(C, num_row_tiles),
        in_specs=[
            pl.BlockSpec((tile_h, H), lambda c, r: (r, 0)),       # height weights
            pl.BlockSpec((1, H, W), lambda c, r: (c, 0, 0)),      # one channel
            pl.BlockSpec((W, new_w_pad), lambda c, r: (0, 0)),    # width weights
        ],
        out_specs=pl.BlockSpec((1, tile_h, new_w_pad), lambda c, r: (c, r, 0)),
        compiler_params=pltpu.CompilerParams(
            dimension_semantics=("parallel", "parallel"),
            vmem_limit_bytes=48 * 1024 * 1024),
    )(wh, img_bf16, wwT)

    return out_padded[:, :new_h, :new_w]


def transform_boxes(boxes: jnp.ndarray, factor_w: float, factor_h: float):
    """boxes: (N, 4) xyxy -> (scaled boxes (N, 4), area (N,)).  Plain jnp:
    too little work for a profitable Pallas kernel (see perf review)."""
    scale = jnp.array([factor_w, factor_h, factor_w, factor_h], dtype=jnp.float32)
    b = boxes.astype(jnp.float32) * scale
    area = (b[:, 3] - b[:, 1]) * (b[:, 2] - b[:, 0])
    return b, area


class FixedImageResizePallas:
    """JAX/Pallas port of FixedImageResize. Image layout: CHW float32."""

    def __init__(self, max_size: int):
        self.max_size = max_size

    def __call__(self, image: jnp.ndarray, target: dict):
        C, H, W = image.shape
        if H > W:
            factor = self.max_size / H
        else:
            factor = self.max_size / W
        new_w = int(W * factor)
        new_h = int(H * factor)
        factor_w = new_w / W
        factor_h = new_h / H

        resized = resize_image_pallas(image, new_h, new_w)
        boxes_out, area = transform_boxes(target["boxes"], factor_w, factor_h)

        new_target = dict(target)
        new_target["boxes"] = boxes_out
        new_target["area"] = area
        return resized, new_target


# ----------------------------------------------------------------------------
# Demo
# ----------------------------------------------------------------------------
if __name__ == "__main__":
    key = jax.random.PRNGKey(0)
    kimg, kbox = jax.random.split(key)

    C, H, W = 3, 16, 12          # non-square so factor comes from height
    N = 8                        # number of boxes
    MAX_SIZE = 32

    image = jax.random.uniform(kimg, (C, H, W), jnp.float32, 0.0, 255.0)

    raw = jax.random.uniform(kbox, (N, 4), jnp.float32)
    x1 = raw[:, 0] * (W / 2.0)
    y1 = raw[:, 1] * (H / 2.0)
    x2 = x1 + raw[:, 2] * (W / 2.0)
    y2 = y1 + raw[:, 3] * (H / 2.0)
    boxes = jnp.stack([x1, y1, x2, y2], axis=1)
    target = {
        "boxes": boxes,
        "area": (boxes[:, 3] - boxes[:, 1]) * (boxes[:, 2] - boxes[:, 0]),
        "labels": jnp.arange(N, dtype=jnp.int32),
    }

    module = FixedImageResizePallas(max_size=MAX_SIZE)
    out_image, out_target = module(image, target)

    jax.block_until_ready(out_image)
    jax.block_until_ready(out_target["boxes"])
    jax.block_until_ready(out_target["area"])

    new_h, new_w = MAX_SIZE, int(W * MAX_SIZE / H)
    assert out_image.shape == (C, new_h, new_w)
    assert out_target["boxes"].shape == (N, 4)
    assert out_target["area"].shape == (N,)

    # f32 reference of the same separable bilinear resample (loose tolerance
    # for the bf16 matmul inputs on 0-255 pixel data).
    wh_f = _interp_matrix(new_h, H, new_h, jnp.float32)
    ww_f = _interp_matrix(new_w, W, new_w, jnp.float32)
    ref = jnp.einsum("ab,cbd,ed->cae", wh_f, image, ww_f)
    max_err = float(jnp.max(jnp.abs(out_image - ref)))
    assert max_err < 5.0, f"resize max abs error too large: {max_err}"

    print("KERNEL_OK")
</pallas_src>

<mosaic_0001>
module attributes {stable_mosaic.version = 11 : i64} {
  func.func @_resize_kernel(%arg0: i32, %arg1: i32, %arg2: memref<32x16xbf16, #tpu.memory_space<vmem>>, %arg3: memref<1x16x12xbf16, #tpu.memory_space<vmem>>, %arg4: memref<12x128xbf16, #tpu.memory_space<vmem>>, %arg5: memref<1x32x128xf32, #tpu.memory_space<vmem>>) attributes {dimension_semantics = [#tpu.dimension_semantics<parallel>, #tpu.dimension_semantics<parallel>], iteration_bounds = array<i64: 3, 1>, scalar_prefetch = 0 : i64, scratch_operands = 0 : i64, tpu.core_type = #tpu.core_type<tc>, window_params = [{transform_indices = @transform_0, window_bounds = array<i64: 32, 16>}, {transform_indices = @transform_1, window_bounds = array<i64: 1, 16, 12>}, {pipeline_mode = #tpu.pipeline_mode<synchronous>, transform_indices = @transform_2, window_bounds = array<i64: 12, 128>}, {transform_indices = @transform_3, window_bounds = array<i64: 1, 32, 128>}]} {
    %c0 = arith.constant 0 : index
    %c0_0 = arith.constant 0 : index
    %0 = vector.load %arg2[%c0, %c0_0] : memref<32x16xbf16, #tpu.memory_space<vmem>>, vector<32x16xbf16>
    %c0_1 = arith.constant 0 : index
    %c0_2 = arith.constant 0 : index
    %c0_3 = arith.constant 0 : index
    %1 = vector.load %arg3[%c0_1, %c0_2, %c0_3] : memref<1x16x12xbf16, #tpu.memory_space<vmem>>, vector<1x16x12xbf16>
    %2 = vector.shape_cast %1 : vector<1x16x12xbf16> to vector<16x12xbf16>
    %cst = arith.constant dense<0.000000e+00> : vector<32x12xf32>
    %3 = tpu.matmul %0, %2, %cst {dimension_numbers = #tpu.dot_dimension_numbers<[1], [0], [0], [1], [0, 0, 1, 1], [], []>} : vector<32x16xbf16>, vector<16x12xbf16>, vector<32x12xf32> -> vector<32x12xf32>
    %4 = arith.truncf %3 : vector<32x12xf32> to vector<32x12xbf16>
    %c0_4 = arith.constant 0 : index
    %c0_5 = arith.constant 0 : index
    %5 = vector.load %arg4[%c0_4, %c0_5] : memref<12x128xbf16, #tpu.memory_space<vmem>>, vector<12x128xbf16>
    %cst_6 = arith.constant dense<0.000000e+00> : vector<32x128xf32>
    %6 = tpu.matmul %4, %5, %cst_6 {dimension_numbers = #tpu.dot_dimension_numbers<[1], [0], [0], [1], [0, 0, 1, 1], [], []>} : vector<32x12xbf16>, vector<12x128xbf16>, vector<32x128xf32> -> vector<32x128xf32>
    %c0_7 = arith.constant 0 : index
    %c0_8 = arith.constant 0 : index
    %c0_9 = arith.constant 0 : index
    %7 = vector.load %arg5[%c0_7, %c0_8, %c0_9] : memref<1x32x128xf32, #tpu.memory_space<vmem>>, vector<1x32x128xf32>
    %8 = vector.shape_cast %7 : vector<1x32x128xf32> to vector<32x128xf32>
    %9 = vector.shape_cast %6 : vector<32x128xf32> to vector<1x32x128xf32>
    tpu.vector_store %arg5[%c0_7, %c0_8, %c0_9], %9 {strides = array<i32>} : memref<1x32x128xf32, #tpu.memory_space<vmem>>, vector<1x32x128xf32>,
    return
  }
  func.func @transform_0(%arg0: i32, %arg1: i32) -> (i32, i32) {
    %c0_i32 = arith.constant 0 : i32
    %c0_i32_0 = arith.constant 0 : i32
    return %arg1, %c0_i32 : i32, i32
  }
  func.func @transform_1(%arg0: i32, %arg1: i32) -> (i32, i32, i32) {
    %c0_i32 = arith.constant 0 : i32
    %c0_i32_0 = arith.constant 0 : i32
    %c0_i32_1 = arith.constant 0 : i32
    return %arg0, %c0_i32, %c0_i32_0 : i32, i32, i32
  }
  func.func @transform_2(%arg0: i32, %arg1: i32) -> (i32, i32) {
    %c0_i32 = arith.constant 0 : i32
    %c0_i32_0 = arith.constant 0 : i32
    %c0_i32_1 = arith.constant 0 : i32
    return %c0_i32, %c0_i32_0 : i32, i32
  }
  func.func @transform_3(%arg0: i32, %arg1: i32) -> (i32, i32, i32) {
    %c0_i32 = arith.constant 0 : i32
    %c0_i32_0 = arith.constant 0 : i32
    return %arg0, %arg1, %c0_i32 : i32, i32, i32
  }
}

</mosaic_0001>

<bundles_post_ra>
// kernel: tpu_custom_call.1
= control target key start
LH: loop header
LB: loop body
LE: loop exit
PB: predicated region body
PF: predicated region fallthrough
CT: control target
= control target key end

     0   :  { %8 = vsyncpa [#allocation3], 0  ;;  %s792_s0 = inlined_call_operand.vmem [shape: bf16[32,16], index: 0, kind: input, shape index: {}]   ;;  %s793_s1 = inlined_call_operand.vmem [shape: bf16[3,16,12], index: 1, kind: input, shape index: {}]   ;;  %s794_s2 = inlined_call_operand.hbm [shape: bf16[12,128], index: 2, kind: input, shape index: {}]   ;;  %s795_s3 = inlined_call_operand.hbm [shape: f32[3,32,128], index: 3, kind: output, shape index: {}]  }
   0x1   :  { %9 = vsyncpa [#allocation4], 0 }
   0x2   :  { %11 = vsyncpa [#allocation4 + $0x1], 0  ;;  %s686_s12 = smov 0   ;;  %s688_s13 = smov 0  }
   0x3   :  { %s690_s14 = smov 0   ;;  %s692_s15 = smov 0  }
   0x4   :  { %s694_s16 = smov 0   ;;  %s696_s17 = smov 0  }
   0x5 LB: > { %s433_s18 = sadd.s32 4294967295, %s659_s17   ;;  %s434_s19 = sadd.s32 4294967294, %s659_s17   ;;  %s659_s17 = sphi %s696_s17, %s17_s17   ;;  %s655_s16 = sphi %s694_s16, %s802_s16   ;;  %s651_s15 = sphi %s692_s15, %s801_s15   ;;  %s647_s14 = sphi %s690_s14, %s800_s14   ;;  %s643_s13 = sphi %s688_s13, %s799_s13   ;;  %s639_s12 = sphi %s686_s12, %s798_s12  }
   0x6   : > { %s29_s20 = sadd.s32 1, %s655_s16  ;;  %s111_s21 = sadd.s32 1, %s647_s14 }
   0x7   : > { %p31_p0 = scmp.ge.s32.totalorder %s29_s20, 3  ;;  %p121_p1 = scmp.ne.s32.totalorder %s647_s14, %s643_s13 }
   0x8   : > { %p122_p2 = scmp.eq.s32.totalorder %s433_s18, 2  ;;  %p127_p3 = scmp.ne.s32.totalorder %s643_s13, %s639_s12 }
   0x9   : > { %s804_s20 = smov (%p31_p0, %s29_s20), 0  ;;  %p128_p5 = scmp.eq.s32.totalorder %s434_s19, 2 }
   0xa   : > { %p726_p4 = por %p122_p2, %p121_p1  ;;  %s106_s23 = ssub.s32 %s655_s16, %s804_s20 }
   0xb   : > { %p435_p6 = scmp.ge.s32.totalorder %s659_s17, 1  ;;  %p109_p7 = scmp.eq.s32.totalorder %s106_s23, 0 }
   0xc   : > { %p733_p8 = por %p128_p5, %p127_p3  ;;  %p135_p9 = scmp.lt.s32.totalorder %s659_s17, 4 }
   0xd   : > { %s739_s25 = scalar_select %p109_p7, %s647_s14, %s111_s21  }
   0xe   : > { %p136_p10 = pnand %p435_p6, %p135_p9  ;;  %p491_p11 = scmp.eq.s32.totalorder %s433_s18, 0 }
   0xf   : > { %s155_s28 = sshll.u32 %s794_s2, 4  ;;  %s661_s29 = smov [#allocation2]   ;;  %s156_s28 = int_to_ptr.hbm [resolvable:$true] %s155_s28 }
  0x10   : > { %p483_p12 = pneg %p136_p10  ;;  %s157_s30 = sshll.u32 %s661_s29, 4  ;;  %s158_s30 = int_to_ptr.vmem [resolvable:$true] %s157_s30 }
  0x11   : > { %s662_s4 = smov 64   ;;  %s663_s5 = smov 4  }
  0x12   : > { %p484_p13 = pnand %p491_p11, %p483_p12  ;;  %181 = sbr.rel (%p136_p10) target bundleno = 320 (0x140), region = 32 }
  0x14   : > { %486 = dma.hbm_to_vmem [thread:$0]  (!%p484_p13), %s156_s28, 128, %s158_s30, [#allocation3], %s662_s4, %s662_s4, %s663_s5  }
  0x17   : > { %630 = dma.done.wait (%p491_p11), [#allocation3], 128  }
  0x18   : > { %632 = vsyncadd (%p491_p11), [#allocation3], 4294967168  ;;  %p217_p0 = scmp.lt.s32.totalorder %s651_s15, 2  ;;  %v470_v1 = vld [vmem:[%s792_s0] sm:$0xff]  ;;  %v471_v2 = vld [vmem:[%s792_s0 + $0x8] sm:$0xff]  ;;  %vm246_vm0 = vcmask 130048  }
  0x19   : > { %v460_v3 = vld [vmem:[#allocation2] sm:$0xf]  ;;  %v473_v4 = vld [vmem:[#allocation2] sm:$0x30]  ;;  %vm288_vm1 = vcmask 1045504   ;;  %vm281_vm2 = vcmask 97280  }
  0x1a   : > { %s218_s6 = scalar_select %p217_p0, %s651_s15, 2  ;;  %v461_v5 = vor.u32 %v473_v4, %v460_v3 }
  0x1b   : > { %s208_s23 = sand.u32 1, %s643_s13   ;;  %s474_s28 = sshll.u32 %s651_s15, 5 }
  0x1c   : > { %s469_s7 = sshll.u32 %s218_s6, 3  ;;  %v290_v6 = vsel %vm288_vm1, %v461_v5, 0  ;;  %s441_s26 = sshll.u32 %s208_s23, 5 }
  0x1d   : > { %s221_s10 = scalar_lea.vmem %s793_s1, %s469_s7  ;;  %299 = vmatpush.bf16.msra.mxu1 %v290_v6  ;;  %476 = vmatpush.bf16.msra.mxu3 %v290_v6  ;;  %s210_s27 = scalar_lea.vmem [#allocation5], %s441_s26 }
  0x1e   : > { %v472_v0 = vld [vmem:[%s221_s10] sm:$0xff]  ;;  %s329_s4 = scalar_lea.hbm %s795_s3, %s474_s28  ;;  %s330_s5 = sshll.u32 %s210_s27, 4  ;;  %s331_s5 = int_to_ptr.vmem [resolvable:$true] %s330_s5 }
  0x1f   : > { %260 = vmatpush.bf16.msra.mxu0 %v472_v0  ;;  %475 = vmatpush.bf16.msra.mxu2 %v472_v0  ;;  %s332_s6 = sshll.u32 %s329_s4, 4  ;;  %s316_s7 = scalar_lea.sflag [#allocation4], %s208_s23  ;;  %s333_s6 = int_to_ptr.hbm [resolvable:$true] %s332_s6 }
  0x20   : > { %s591_s8 = sshra.s32 %s333_s6, 4  ;;  %s597_s11 = scalar_lea.hbm %s795_s3, 96  ;;  %s592_s8 = int_to_ptr.hbm [resolvable:$true] %s591_s8 }
  0x21   : > { %s593_s9 = scalar_lea.hbm %s592_s8, 32  ;;  %p598_p5 = scmp.lt.s32.totalorder %s592_s8, %s795_s3 }
  0x22   : > { %456 = vmatmul.msk.bf16.vlgmr.msra.gmra.mxu0 %vm246_vm0, %v470_v1  ;;  %457 = vmatmul.msk.bf16.vlgmr.msra.gmra.mxu2 %vm246_vm0, %v471_v2  ;;  %p594_p1 = scmp.ne.s32.totalorder %s592_s8, %s593_s9  ;;  %p599_p6 = scmp.lt.s32.totalorder %s597_s11, %s593_s9 }
  0x24   : > { %p595_p2 = pnand %p594_p1, %p726_p4  ;;  %p600_p7 = por %p599_p6, %p598_p5 }
  0x26   : > { %p596_p3 = pneg %p595_p2 }
  0x28   : > { %p601_p9 = pnand %p600_p7, %p596_p3 }
  0x9f   : > { %v262_v7 = vpop.f32.mrf.mxu0 }
  0xa5   : > { %v267_v8 = vpop.f32.mrf.mxu2 }
  0xa7   : > { %v264_v9 = vpop.f32.mrf.mxu0 }
  0xa8   : > { %v272_v10 = vpack.c.bf16 %v264_v9, %v262_v7 }
  0xaa   : > { %462 = vmatmul.msk.bf16.vlgmr.msra.gmra.mxu1 %vm281_vm2, %v272_v10 }
  0xad   : > { %v269_v11 = vpop.f32.mrf.mxu2 }
  0xae   : > { %v273_v12 = vpack.c.bf16 %v269_v11, %v267_v8 }
  0xb0   : > { %463 = vmatmul.msk.bf16.vlgmr.msra.gmra.mxu3 %vm281_vm2, %v273_v12 }
 0x127   : > { %v301_v13 = vpop.f32.mrf.mxu1 }
 0x128   : > { %311 = vst [vmem:[%s210_s27] sm:$0xff] %v301_v13 }
 0x12f   : > { %v303_v14 = vpop.f32.mrf.mxu1 }
 0x130   : > { %312 = vst [vmem:[%s210_s27 + $0x8] sm:$0xff] %v303_v14 }
 0x133   : > { %v306_v15 = vpop.f32.mrf.mxu3 }
 0x134   : > { %313 = vst [vmem:[%s210_s27 + $0x10] sm:$0xff] %v306_v15 }
 0x13b   : > { %v308_v16 = vpop.f32.mrf.mxu3 }
 0x13c   : > { %314 = vst [vmem:[%s210_s27 + $0x18] sm:$0xff] %v308_v16 }
 0x13d   : > { %604 = shalt.err (!%p601_p9)
}
 0x13e   : > { %s664_s21 = smov 128   ;;  %s665_s23 = smov 8  }
 0x13f   : > { %481 = dma.vmem_to_hbm [thread:$0]  (%p726_p4), %s331_s5, 512, %s333_s6, %s316_s7, %s664_s21, %s664_s21, %s665_s23  }
 0x140 PF: > { %p493_p10 = scmp.ge.s32.totalorder %s659_s17, 2  ;;  %s347_s26 = sand.u32 1, %s639_s12  }
 0x141   : > { %s348_s27 = scalar_lea.sflag [#allocation4], %s347_s26 }
 0x142   : > { %p488_p11 = pnand %p493_p10, %p733_p8 }
 0x144   : > { %p489_p12 = pneg %p488_p11 }
 0x146   : > { %634 = dma.done.wait (%p489_p12), %s348_s27, 512  }
 0x147   : > { %636 = vsyncadd (%p489_p12), %s348_s27, 4294966784  ;;  %s17_s17 = sadd.s32 1, %s659_s17   ;;  %s798_s12 = smov %s643_s13 }
 0x148   : > { %p14_p13 = scmp.ge.s32.totalorder %s17_s17, 5   ;;  %s799_s13 = smov %s647_s14 }
 0x149   : > { %s800_s14 = smov %s739_s25  ;;  %s801_s15 = smov %s655_s16 }
 0x14a   : > { %s802_s16 = smov %s804_s20  ;;  %16 = sbr.rel (!%p14_p13) target bundleno = 5 (0x5), region = 75 }
 0x14f   :  { %354 = vsyncpa [#allocation3], 1 }
 0x150   :  { %356 = vsyncpa [#allocation3 + $0x1], 1 }
 0x151   :  { %357 = vsyncpa [#allocation4], 1 }
 0x152   :  { %359 = vsyncpa [#allocation4 + $0x1], 1 }

</bundles_post_ra>
